<compile_context>
chip_gen: v7x
topology: tpu7x:2x2x1
jax: 0.10.0
libtpu: 0.0.40
codegen_flags: <defaults>
</compile_context>

<pallas_src>
import functools
import math

import jax
import jax.numpy as jnp
from jax import lax
from jax.experimental import pallas as pl
from jax.experimental.pallas import tpu as pltpu

_ROWS_PER_STEP = 8                         # fallback: tokens gathered per grid step
_MAX_TOKENS_PER_BLOCK = 256                # fast path: tokens handled per grid step
_FASTPATH_VMEM_BUDGET = 40 * 1024 * 1024   # conservative vs v7x 64 MiB physical VMEM
_FASTPATH_VMEM_LIMIT = 48 * 1024 * 1024    # scoped limit (v5e default is only 16 MiB)


def _round_up(x, m):
    return ((x + m - 1) // m) * m


# --------------------- fast path: VMEM-resident table ---------------------

def _vmem_gather_kernel(ids_ref, table_ref, out_ref, *, tokens_per_block):
    # ids_ref:   (n_pad,) int32 in SMEM (scalar prefetch)
    # table_ref: (V, D)   full embedding table, held resident in VMEM
    # out_ref:   (T, D)   output block for this grid step
    base = pl.program_id(0) * tokens_per_block

    def body(t, carry):
        row = ids_ref[base + t]
        out_ref[pl.ds(t, 1), :] = table_ref[pl.ds(row, 1), :]
        return carry

    lax.fori_loop(0, tokens_per_block, body, 0)


def _embedding_vmem_resident(idx_flat, table, n, tokens_per_block):
    v, d = table.shape
    n_pad = _round_up(n, tokens_per_block)
    if n_pad != n:
        idx_flat = jnp.pad(idx_flat, (0, n_pad - n))

    grid_spec = pltpu.PrefetchScalarGridSpec(
        num_scalar_prefetch=1,
        grid=(n_pad // tokens_per_block,),
        in_specs=[
            # Whole table, constant block index -> DMA'd once, kept in VMEM.
            pl.BlockSpec((v, d), lambda i, ids: (0, 0)),
        ],
        out_specs=pl.BlockSpec((tokens_per_block, d), lambda i, ids: (i, 0)),
    )

    out = pl.pallas_call(
        functools.partial(_vmem_gather_kernel, tokens_per_block=tokens_per_block),
        out_shape=jax.ShapeDtypeStruct((n_pad, d), table.dtype),
        grid_spec=grid_spec,
        compiler_params=pltpu.CompilerParams(
            dimension_semantics=("parallel",),
            vmem_limit_bytes=_FASTPATH_VMEM_LIMIT,
        ),
    )(idx_flat, table)
    return out[:n] if n_pad != n else out


# ------------------- fallback: HBM row gather, 8 rows/step -----------------

def _hbm_row_gather_kernel(ids_ref, *refs):
    # ids_ref: (n_pad,) int32 in SMEM (consumed only by the index_maps)
    # refs:    R row tiles of shape (1, D) gathered from HBM, then the (R, D)
    #          output block.
    del ids_ref
    row_refs, out_ref = refs[:-1], refs[-1]
    for r, row_ref in enumerate(row_refs):
        out_ref[r, :] = row_ref[0, :]


def _embedding_hbm_gather(idx_flat, table, n):
    v, d = table.shape
    r_per = _ROWS_PER_STEP
    n_pad = _round_up(n, r_per)
    if n_pad != n:
        idx_flat = jnp.pad(idx_flat, (0, n_pad - n))

    def row_spec(r):
        return pl.BlockSpec((1, d), lambda i, ids, r=r: (ids[i * r_per + r], 0))

    grid_spec = pltpu.PrefetchScalarGridSpec(
        num_scalar_prefetch=1,
        grid=(n_pad // r_per,),
        in_specs=[row_spec(r) for r in range(r_per)],
        out_specs=pl.BlockSpec((r_per, d), lambda i, ids: (i, 0)),
    )

    out = pl.pallas_call(
        _hbm_row_gather_kernel,
        out_shape=jax.ShapeDtypeStruct((n_pad, d), table.dtype),
        grid_spec=grid_spec,
        compiler_params=pltpu.CompilerParams(
            dimension_semantics=("parallel",),
        ),
    )(idx_flat, *([table] * r_per))
    return out[:n] if n_pad != n else out


# --------------------------------- wrapper ---------------------------------

def simple_embedding(idx, table, *, force_hbm_gather=False):
    """Pallas equivalent of SimpleEmbedding.forward(idx): table[idx]."""
    orig_shape = idx.shape
    n = math.prod(orig_shape) if orig_shape else 1
    v, d = table.shape

    # Flatten + clamp indices (PyTorch raises on out-of-range; we clamp).
    idx_flat = jnp.clip(idx.reshape(-1).astype(jnp.int32), 0, v - 1)

    itemsize = jnp.dtype(table.dtype).itemsize
    tokens_per_block = min(_MAX_TOKENS_PER_BLOCK, _round_up(n, 8))
    fastpath_bytes = (2 * v * d + 2 * tokens_per_block * d) * itemsize
    use_fast = (not force_hbm_gather) and fastpath_bytes <= _FASTPATH_VMEM_BUDGET

    if use_fast:
        out = _embedding_vmem_resident(idx_flat, table, n, tokens_per_block)
    else:
        out = _embedding_hbm_gather(idx_flat, table, n)
    return out.reshape(*orig_shape, d)


def init_simple_embedding(key, num_embeddings, embedding_dim):
    # PyTorch: Normal(0, 0.05).sample((num_embeddings, embedding_dim))
    return jax.random.normal(key, (num_embeddings, embedding_dim), jnp.float32) * 0.05


if __name__ == "__main__":
    num_embeddings = 32
    embedding_dim = 32
    batch, seq = 2, 8

    key = jax.random.PRNGKey(0)
    k_w, k_idx = jax.random.split(key)

    weight = init_simple_embedding(k_w, num_embeddings, embedding_dim)
    idx = jax.random.randint(k_idx, (batch, seq), 0, num_embeddings, dtype=jnp.int32)

    ref = jnp.take(weight, idx, axis=0)  # == torch nn.Embedding gather

    # Fast path (table is tiny -> VMEM-resident in-kernel gather).
    out = jax.block_until_ready(simple_embedding(idx, weight))
    assert out.shape == (batch, seq, embedding_dim), out.shape
    assert jnp.allclose(out, ref, atol=1e-6), "fast path mismatch vs reference"

    # Large-vocab fallback (HBM row gather, 8 rows per grid step).
    out_hbm = jax.block_until_ready(
        simple_embedding(idx, weight, force_hbm_gather=True))
    assert jnp.allclose(out_hbm, ref, atol=1e-6), "HBM gather mismatch vs reference"

    print("KERNEL_OK")
</pallas_src>

<mosaic_0001>
module attributes {stable_mosaic.version = 11 : i64} {
  func.func @_vmem_gather_kernel(%arg0: i32, %arg1: memref<16xi32, #tpu.memory_space<smem>>, %arg2: memref<32x32xf32, #tpu.memory_space<vmem>>, %arg3: memref<16x32xf32, #tpu.memory_space<vmem>>) attributes {dimension_semantics = [#tpu.dimension_semantics<parallel>], iteration_bounds = array<i64: 1>, scalar_prefetch = 1 : i64, scratch_operands = 0 : i64, tpu.core_type = #tpu.core_type<tc>, window_params = [{pipeline_mode = #tpu.pipeline_mode<synchronous>, transform_indices = @transform_0, window_bounds = array<i64: 32, 32>}, {transform_indices = @transform_1, window_bounds = array<i64: 16, 32>}]} {
    %c16_i32 = arith.constant 16 : i32
    %0 = arith.muli %arg0, %c16_i32 : i32
    %c0_i32 = arith.constant 0 : i32
    %c16_i32_0 = arith.constant 16 : i32
    %1 = arith.addi %c0_i32, %c16_i32_0 : i32
    %c1_i32 = arith.constant 1 : i32
    scf.for %arg4 = %c0_i32 to %1 step %c1_i32  : i32 {
      %2 = arith.addi %0, %arg4 : i32
      %3 = arith.index_cast %2 : i32 to index
      %4 = memref.load %arg1[%3] : memref<16xi32, #tpu.memory_space<smem>>
      %5 = arith.index_cast %4 : i32 to index
      %c0 = arith.constant 0 : index
      %6 = vector.load %arg2[%5, %c0] : memref<32x32xf32, #tpu.memory_space<vmem>>, vector<1x32xf32>
      %7 = arith.index_cast %arg4 : i32 to index
      %c0_2 = arith.constant 0 : index
      %8 = vector.load %arg3[%7, %c0_2] : memref<16x32xf32, #tpu.memory_space<vmem>>, vector<1x32xf32>
      tpu.vector_store %arg3[%7, %c0_2], %6 {strides = array<i32>} : memref<16x32xf32, #tpu.memory_space<vmem>>, vector<1x32xf32>,
    }
    %c16_i32_1 = arith.constant 16 : i32
    return
  }
  func.func @transform_0(%arg0: i32, %arg1: memref<16xi32, #tpu.memory_space<smem>>) -> (i32, i32) {
    %c0_i32 = arith.constant 0 : i32
    %c0_i32_0 = arith.constant 0 : i32
    %c0_i32_1 = arith.constant 0 : i32
    return %c0_i32, %c0_i32_0 : i32, i32
  }
  func.func @transform_1(%arg0: i32, %arg1: memref<16xi32, #tpu.memory_space<smem>>) -> (i32, i32) {
    %c0_i32 = arith.constant 0 : i32
    %c0_i32_0 = arith.constant 0 : i32
    return %arg0, %c0_i32 : i32, i32
  }
}

</mosaic_0001>

<bundles_post_ra>
// kernel: tpu_custom_call.1
= control target key start
LH: loop header
LB: loop body
LE: loop exit
PB: predicated region body
PF: predicated region fallthrough
CT: control target
= control target key end

     0   :  { %s209_s0 = inlined_call_operand.hbm [shape: s32[16], index: 0, kind: input, shape index: {}]   ;;  %s210_s1 = inlined_call_operand.hbm [shape: f32[32,32], index: 1, kind: input, shape index: {}]   ;;  %s211_s2 = inlined_call_operand.hbm [shape: f32[16,32], index: 2, kind: output, shape index: {}]  }
   0x1   :  { %s79_s11 = scalar_lea.hbm %s209_s0, 16 }
   0x2   :  { %p80_p0 = scmp.ne.s32.totalorder %s209_s0, %s79_s11  ;;  %p83_p1 = scmp.lt.u32.totalorder %s79_s11, %s209_s0 }
   0x4   :  { %p85_p2 = pnand %p83_p1, %p80_p0 }
   0x6   :  { %88 = shalt.err (!%p85_p2)  }
   0x7   :  { %s147_s16 = smov [#allocation3]  }
   0x8   :  { %8 = dma.hbm_to_smem %s209_s0, 16, %s147_s16, [#allocation2] }
   0x9   :  { %137 = dma.done.wait [#allocation2], 16 }
   0xa   :  { %138 = vsyncadd [#allocation2], 4294967280 }
   0xb   :  { %10 = sfence }
   0xc   :  { %11 = vsyncpa [#allocation5], 0 }
   0xd   :  { %12 = vsyncpa [#allocation6], 0  ;;  %s148_s19 = smov [#allocation4]   ;;  %s89_s23 = scalar_lea.hbm %s210_s1, 512 }
   0xe   :  { %s18_s20 = sshll.u32 %s148_s19, 4  ;;  %p90_p3 = scmp.ne.s32.totalorder %s210_s1, %s89_s23  ;;  %s19_s20 = int_to_ptr.vmem [resolvable:$true] %s18_s20 }
   0xf   :  { %p93_p4 = scmp.lt.u32.totalorder %s89_s23, %s210_s1 }
  0x11   :  { %p95_p5 = pnand %p93_p4, %p90_p3 }
  0x13   :  { %98 = shalt.err (!%p95_p5)
}
  0x14   :  { %s99_s0 = scalar_lea.vmem %s19_s20, 512  ;;  %p104_p7 = scmp.lt.s32.totalorder %s19_s20, %s19_s20 }
  0x15   :  { %p100_p6 = scmp.ne.s32.totalorder %s19_s20, %s99_s0  ;;  %p105_p8 = scmp.lt.s32.totalorder %s99_s0, %s99_s0 }
  0x17   :  { %p106_p9 = por %p105_p8, %p104_p7 }
  0x19   :  { %p107_p10 = pnand %p106_p9, %p100_p6 }
  0x1b   :  { %110 = shalt.err (!%p107_p10)
}
  0x1c   :  { %s149_s28 = smov 128   ;;  %s150_s29 = smov 8  }
  0x1d   :  { %24 = dma.hbm_to_vmem [thread:$0]  %s210_s1, 512, %s19_s20, [#allocation5], %s149_s28, %s149_s28, %s150_s29  }
  0x1e   :  { %139 = dma.done.wait [#allocation5], 512  }
  0x1f   :  { %140 = vsyncadd [#allocation5], 4294966784  ;;  %s143_s4 = smov 0  }
  0x20 LB: > { %s36_s5 = sld [smem:[#allocation3 + %s145_s4]]  ;;  %vm40_vm0 = vcmask 253952   ;;  %s39_s7 = scalar_lea.vmem [#allocation7], %s145_s4  ;;  %s145_s4 = sphi %s143_s4, %s34_s4  }
  0x21   : > { %s34_s4 = sadd.s32 1, %s145_s4  }
  0x22   : > { %p31_p11 = scmp.ge.s32.totalorder %s34_s4, 16  }
  0x23   :  { %s151_s8 = smov (%p31_p11), [#allocation7]  }
  0x24   :  { %33 = sbr.rel (!%p31_p11) target bundleno = 32 (0x20), region = 37  ;;  %s47_s9 = sshll.u32 (%p31_p11), %s151_s8, 4  ;;  %s48_s9 = int_to_ptr.vmem [resolvable:$true] %s47_s9 }
  0x25   :  { %s111_s1 = scalar_lea.vmem (%p31_p11), %s48_s9, 256  ;;  %p116_p13 = scmp.lt.s32.totalorder (%p31_p11), %s48_s9, %s48_s9 }
  0x26   : > { %s37_s6 = scalar_lea.vmem [#allocation4], %s36_s5  ;;  %p112_p12 = scmp.ne.s32.totalorder (%p31_p11), %s48_s9, %s111_s1 }
  0x27   : > { %v38_v0 = vld [vmem:[%s37_s6] sm:$0x1]  ;;  %p117_p0 = scmp.lt.s32.totalorder (%p31_p11), %s111_s1, %s111_s1 }
  0x28   : > { %41 = vst.msk [vmem:[%s39_s7] sm:$0x1] %vm40_vm0, %v38_v0 }
  0x29   :  { %p118_p1 = por (%p31_p11), %p117_p0, %p116_p13 }
  0x2b   :  { %p119_p2 = pnand %p118_p1, %p112_p12 }
  0x2d   :  { %122 = shalt.err (!%p119_p2)
}
  0x2e   :  { %s123_s12 = scalar_lea.hbm %s211_s2, 256 }
  0x2f   :  { %p124_p3 = scmp.ne.s32.totalorder %s211_s2, %s123_s12  ;;  %p127_p4 = scmp.lt.u32.totalorder %s123_s12, %s211_s2 }
  0x31   :  { %p129_p5 = pnand %p127_p4, %p124_p3 }
  0x33   :  { %132 = shalt.err (!%p129_p5)
}
  0x34   :  { %53 = dma.vmem_to_hbm [thread:$0]  %s48_s9, 256, %s211_s2, [#allocation6], %s149_s28, %s149_s28, %s150_s29  }
  0x35   :  { %141 = dma.done.wait [#allocation6], 256  }
  0x36   :  { %142 = vsyncadd [#allocation6], 4294967040 }
  0x37   :  { %57 = vsyncpa [#allocation5], 1 }
  0x38   :  { %58 = vsyncpa [#allocation6], 1 }

</bundles_post_ra>
